<compile_context>
chip_gen: v5e
topology: v5e:2x2
jax: 0.10.0
libtpu: 0.0.40
codegen_flags: <defaults>
</compile_context>

<pallas_src>
import functools

import jax
import jax.numpy as jnp
from jax import lax
from jax.experimental import pallas as pl
from jax.experimental.pallas import tpu as pltpu

D_MODEL = 32
NHEAD = 4
HEAD_DIM = D_MODEL // NHEAD
SEQ = 8
BATCH = 2
LN_EPS = 1e-5

_NEG_INF = -1e30


def _self_attn_kernel(x_ref, pos_ref, w_ref, b_ref, out_ref, *, n_batch, nhead):
    """x_ref/pos_ref: (L*N, E) with row index i = l*N + n (row-major flatten of (L,N,E)).
    w_ref: (E, 4E) = [Wq.T*scale | Wk.T | Wv.T | Wo.T]   (pre-transposed on host)
    b_ref: (2, 3E): row0 = [bq*scale | bk | bv], row1 = [bo | gamma | beta]
    """
    ln, e = x_ref.shape
    dh = e // nhead

    x = x_ref[...]                        # (LN, E)   value path (tgt)
    qk_in = x + pos_ref[...]              # (LN, E)   q = k = tgt + query_pos
    w = w_ref[...]                        # (E, 4E)
    b = b_ref[...]                        # (2, 3E)

    # fused q/k projection (weights already transposed -> plain x @ w), v separately
    qk = jnp.dot(qk_in, w[:, :2 * e], preferred_element_type=jnp.float32) + b[0, :2 * e]
    v = jnp.dot(x, w[:, 2 * e:3 * e], preferred_element_type=jnp.float32) + b[0, 2 * e:]
    wo_t = w[:, 3 * e:]                   # (E, E) == Wo.T

    # rows i and j belong to the same batch iff i % N == j % N
    row_b = lax.broadcasted_iota(jnp.int32, (ln, ln), 0) % n_batch
    col_b = lax.broadcasted_iota(jnp.int32, (ln, ln), 1) % n_batch
    same_batch = row_b == col_b

    dn = (((1,), (1,)), ((), ()))         # contract last dims (q @ k.T), no transpose op
    o = None
    for h in range(nhead):                # static loop over heads
        qh = qk[:, h * dh:(h + 1) * dh]           # (LN, Dh)  already scaled via W/b
        kh = qk[:, e + h * dh:e + (h + 1) * dh]   # (LN, Dh)
        vh = v[:, h * dh:(h + 1) * dh]            # (LN, Dh)

        s = lax.dot_general(qh, kh, dn, preferred_element_type=jnp.float32)  # (LN, LN)
        s = jnp.where(same_batch, s, _NEG_INF)    # kill cross-batch attention
        s = s - jnp.max(s, axis=-1, keepdims=True)
        p = jnp.exp(s)
        p = p * pl.reciprocal(jnp.sum(p, axis=-1, keepdims=True), approx=False)

        head = jnp.dot(p, vh, preferred_element_type=jnp.float32)            # (LN, Dh)
        # fold this head straight into the output projection (no concat / scratch)
        contrib = jnp.dot(head, wo_t[h * dh:(h + 1) * dh, :],
                          preferred_element_type=jnp.float32)                # (LN, E)
        o = contrib if o is None else o + contrib

    o = o + b[1, :e]                      # out_proj bias

    # residual (dropout p=0.0 -> identity) + LayerNorm over feature dim
    y = x + o
    mean = jnp.mean(y, axis=-1, keepdims=True)
    yc = y - mean
    var = jnp.mean(yc * yc, axis=-1, keepdims=True)
    y = yc * lax.rsqrt(var + LN_EPS)
    out_ref[...] = y * b[1, e:2 * e] + b[1, 2 * e:]


@jax.jit
def self_attention_layer(tgt_lne, query_pos_lne, params):
    """tgt_lne, query_pos_lne: (L, N, E) float32, like PyTorch MHA (batch_first=False)."""
    L, N, E = tgt_lne.shape
    head_dim = E // NHEAD
    scale = float(head_dim) ** -0.5

    # free row-major flattens (no data movement, unlike the old transposes)
    x2d = tgt_lne.reshape(L * N, E)
    p2d = query_pos_lne.reshape(L * N, E)

    # host-side one-time packing: pre-transpose weights, fold softmax scale into q,
    # pack all weights into one (E, 4E) array and all vectors into one (2, 3E) array.
    w_packed = jnp.concatenate(
        [params["wq"].T * scale, params["wk"].T, params["wv"].T, params["wo"].T], axis=1)
    b_packed = jnp.stack(
        [jnp.concatenate([params["bq"] * scale, params["bk"], params["bv"]]),
         jnp.concatenate([params["bo"], params["gamma"], params["beta"]])], axis=0)

    kernel = functools.partial(_self_attn_kernel, n_batch=N, nhead=NHEAD)

    out2d = pl.pallas_call(
        kernel,
        out_shape=jax.ShapeDtypeStruct((L * N, E), jnp.float32),
        grid_spec=pltpu.PrefetchScalarGridSpec(
            num_scalar_prefetch=0,
            grid=(1,),
            in_specs=[
                pl.BlockSpec((L * N, E), lambda i: (0, 0)),
                pl.BlockSpec((L * N, E), lambda i: (0, 0)),
                pl.BlockSpec((E, 4 * E), lambda i: (0, 0)),
                pl.BlockSpec((2, 3 * E), lambda i: (0, 0)),
            ],
            out_specs=pl.BlockSpec((L * N, E), lambda i: (0, 0)),
        ),
        compiler_params=pltpu.CompilerParams(dimension_semantics=("arbitrary",)),
    )(x2d, p2d, w_packed, b_packed)

    return out2d.reshape(L, N, E)


def _xavier_uniform(key, shape):
    fan_out, fan_in = shape
    bound = jnp.sqrt(6.0 / (fan_in + fan_out))
    return jax.random.uniform(key, shape, jnp.float32, -bound, bound)


def make_params(key, d_model):
    k_in, k_out = jax.random.split(key, 2)
    # nn.MultiheadAttention.in_proj_weight: (3*E, E), xavier_uniform'd
    in_proj_w = _xavier_uniform(k_in, (3 * d_model, d_model))
    wq, wk, wv = jnp.split(in_proj_w, 3, axis=0)
    wo = _xavier_uniform(k_out, (d_model, d_model))
    zeros = jnp.zeros((d_model,), jnp.float32)
    return dict(
        wq=wq, wk=wk, wv=wv,
        bq=zeros, bk=zeros, bv=zeros,        # in_proj_bias = 0 (PyTorch init)
        wo=wo, bo=zeros,                     # out_proj.bias = 0
        gamma=jnp.ones((d_model,), jnp.float32),   # LayerNorm defaults
        beta=zeros,
    )


def _reference(tgt, qpos, p):
    """Pure-JAX reference of forward_post, same (L, N, E) convention."""
    L, N, E = tgt.shape
    qk = tgt + qpos
    q = qk @ p["wq"].T + p["bq"]
    k = qk @ p["wk"].T + p["bk"]
    v = tgt @ p["wv"].T + p["bv"]

    def heads(x):  # (L, N, E) -> (N, H, L, Dh)
        return x.reshape(L, N, NHEAD, HEAD_DIM).transpose(1, 2, 0, 3)

    qh, kh, vh = heads(q), heads(k), heads(v)
    scores = jnp.einsum("nhld,nhmd->nhlm", qh, kh) / jnp.sqrt(float(HEAD_DIM))
    attn = jax.nn.softmax(scores, axis=-1)
    o = jnp.einsum("nhlm,nhmd->nhld", attn, vh)          # (N, H, L, Dh)
    o = o.transpose(2, 0, 1, 3).reshape(L, N, E)
    o = o @ p["wo"].T + p["bo"]
    x = tgt + o
    mean = x.mean(-1, keepdims=True)
    var = ((x - mean) ** 2).mean(-1, keepdims=True)
    return (x - mean) / jnp.sqrt(var + LN_EPS) * p["gamma"] + p["beta"]


if __name__ == "__main__":
    key = jax.random.PRNGKey(0)
    k1, k2, k3 = jax.random.split(key, 3)
    params = make_params(k1, D_MODEL)

    tgt = jax.random.normal(k2, (SEQ, BATCH, D_MODEL), jnp.float32)        # (L, N, E)
    query_pos = jax.random.normal(k3, (SEQ, BATCH, D_MODEL), jnp.float32)  # (L, N, E)

    out = self_attention_layer(tgt, query_pos, params)
    out = jax.block_until_ready(out)

    ref = _reference(tgt, query_pos, params)
    assert out.shape == (SEQ, BATCH, D_MODEL)
    assert jnp.allclose(out, ref, atol=1e-4, rtol=1e-4), "mismatch vs reference"

    print("KERNEL_OK")
</pallas_src>

<mosaic_0001>
module attributes {stable_mosaic.version = 11 : i64} {
  func.func @_self_attn_kernel(%arg0: i32, %arg1: memref<16x32xf32, #tpu.memory_space<vmem>>, %arg2: memref<16x32xf32, #tpu.memory_space<vmem>>, %arg3: memref<32x128xf32, #tpu.memory_space<vmem>>, %arg4: memref<2x96xf32, #tpu.memory_space<vmem>>, %arg5: memref<16x32xf32, #tpu.memory_space<vmem>>) attributes {dimension_semantics = [#tpu.dimension_semantics<arbitrary>], iteration_bounds = array<i64: 1>, scalar_prefetch = 0 : i64, scratch_operands = 0 : i64, tpu.core_type = #tpu.core_type<tc>, window_params = [{pipeline_mode = #tpu.pipeline_mode<synchronous>, transform_indices = @transform_0, window_bounds = array<i64: 16, 32>}, {pipeline_mode = #tpu.pipeline_mode<synchronous>, transform_indices = @transform_1, window_bounds = array<i64: 16, 32>}, {pipeline_mode = #tpu.pipeline_mode<synchronous>, transform_indices = @transform_2, window_bounds = array<i64: 32, 128>}, {pipeline_mode = #tpu.pipeline_mode<synchronous>, transform_indices = @transform_3, window_bounds = array<i64: 2, 96>}, {pipeline_mode = #tpu.pipeline_mode<synchronous>, transform_indices = @transform_4, window_bounds = array<i64: 16, 32>}]} {
    %c0 = arith.constant 0 : index
    %c0_0 = arith.constant 0 : index
    %0 = vector.load %arg1[%c0, %c0_0] : memref<16x32xf32, #tpu.memory_space<vmem>>, vector<16x32xf32>
    %c0_1 = arith.constant 0 : index
    %c0_2 = arith.constant 0 : index
    %1 = vector.load %arg2[%c0_1, %c0_2] : memref<16x32xf32, #tpu.memory_space<vmem>>, vector<16x32xf32>
    %2 = arith.addf %0, %1 : vector<16x32xf32>
    %c0_3 = arith.constant 0 : index
    %c0_4 = arith.constant 0 : index
    %3 = vector.load %arg3[%c0_3, %c0_4] : memref<32x128xf32, #tpu.memory_space<vmem>>, vector<32x128xf32>
    %c0_5 = arith.constant 0 : index
    %c0_6 = arith.constant 0 : index
    %4 = vector.load %arg4[%c0_5, %c0_6] : memref<2x96xf32, #tpu.memory_space<vmem>>, vector<2x96xf32>
    %5 = vector.extract_strided_slice %3 {offsets = [0, 0], sizes = [32, 64], strides = [1, 1]} : vector<32x128xf32> to vector<32x64xf32>
    %cst = arith.constant dense<0.000000e+00> : vector<16x64xf32>
    %6 = tpu.matmul %2, %5, %cst {dimension_numbers = #tpu.dot_dimension_numbers<[1], [0], [0], [1], [0, 0, 1, 1], [], []>} : vector<16x32xf32>, vector<32x64xf32>, vector<16x64xf32> -> vector<16x64xf32>
    %7 = vector.extract_strided_slice %4 {offsets = [0, 0], sizes = [1, 64], strides = [1, 1]} : vector<2x96xf32> to vector<1x64xf32>
    %8 = vector.shape_cast %7 : vector<1x64xf32> to vector<64xf32>
    %9 = vector.shape_cast %8 : vector<64xf32> to vector<1x64xf32>
    %10 = vector.broadcast %9 : vector<1x64xf32> to vector<16x64xf32>
    %11 = arith.addf %6, %10 : vector<16x64xf32>
    %12 = vector.extract_strided_slice %3 {offsets = [0, 64], sizes = [32, 32], strides = [1, 1]} : vector<32x128xf32> to vector<32x32xf32>
    %cst_7 = arith.constant dense<0.000000e+00> : vector<16x32xf32>
    %13 = tpu.matmul %0, %12, %cst_7 {dimension_numbers = #tpu.dot_dimension_numbers<[1], [0], [0], [1], [0, 0, 1, 1], [], []>} : vector<16x32xf32>, vector<32x32xf32>, vector<16x32xf32> -> vector<16x32xf32>
    %14 = vector.extract_strided_slice %4 {offsets = [0, 64], sizes = [1, 32], strides = [1, 1]} : vector<2x96xf32> to vector<1x32xf32>
    %15 = vector.shape_cast %14 : vector<1x32xf32> to vector<32xf32>
    %16 = vector.shape_cast %15 : vector<32xf32> to vector<1x32xf32>
    %17 = vector.broadcast %16 : vector<1x32xf32> to vector<16x32xf32>
    %18 = arith.addf %13, %17 : vector<16x32xf32>
    %19 = vector.extract_strided_slice %3 {offsets = [0, 96], sizes = [32, 32], strides = [1, 1]} : vector<32x128xf32> to vector<32x32xf32>
    %20 = tpu.iota {dimensions = array<i32: 0>} : vector<16x16xi32>
    %c2_i32 = arith.constant 2 : i32
    %c0_i32 = arith.constant 0 : i32
    %21 = arith.cmpi eq, %c2_i32, %c0_i32 : i32
    %c1_i32 = arith.constant 1 : i32
    %22 = arith.select %21, %c1_i32, %c2_i32 : i32
    %23 = vector.broadcast %22 : i32 to vector<16x16xi32>
    %24 = arith.remsi %20, %23 : vector<16x16xi32>
    %c0_i32_8 = arith.constant 0 : i32
    %25 = vector.broadcast %c0_i32_8 : i32 to vector<16x16xi32>
    %26 = arith.cmpi ne, %24, %25 : vector<16x16xi32>
    %c0_i32_9 = arith.constant 0 : i32
    %27 = vector.broadcast %c0_i32_9 : i32 to vector<16x16xi32>
    %28 = arith.cmpi slt, %24, %27 : vector<16x16xi32>
    %c0_i32_10 = arith.constant 0 : i32
    %29 = arith.cmpi slt, %22, %c0_i32_10 : i32
    %30 = vector.broadcast %29 : i1 to vector<16x16xi1>
    %31 = vector.broadcast %30 : vector<16x16xi1> to vector<16x16xi1>
    %32 = arith.xori %28, %31 : vector<16x16xi1>
    %33 = arith.andi %32, %26 : vector<16x16xi1>
    %34 = vector.broadcast %22 : i32 to vector<16x16xi32>
    %35 = arith.addi %24, %34 : vector<16x16xi32>
    %36 = arith.select %33, %35, %24 : vector<16x16xi1>, vector<16x16xi32>
    %37 = tpu.iota {dimensions = array<i32: 1>} : vector<16x16xi32>
    %c2_i32_11 = arith.constant 2 : i32
    %c0_i32_12 = arith.constant 0 : i32
    %38 = arith.cmpi eq, %c2_i32_11, %c0_i32_12 : i32
    %c1_i32_13 = arith.constant 1 : i32
    %39 = arith.select %38, %c1_i32_13, %c2_i32_11 : i32
    %40 = vector.broadcast %39 : i32 to vector<16x16xi32>
    %41 = arith.remsi %37, %40 : vector<16x16xi32>
    %c0_i32_14 = arith.constant 0 : i32
    %42 = vector.broadcast %c0_i32_14 : i32 to vector<16x16xi32>
    %43 = arith.cmpi ne, %41, %42 : vector<16x16xi32>
    %c0_i32_15 = arith.constant 0 : i32
    %44 = vector.broadcast %c0_i32_15 : i32 to vector<16x16xi32>
    %45 = arith.cmpi slt, %41, %44 : vector<16x16xi32>
    %c0_i32_16 = arith.constant 0 : i32
    %46 = arith.cmpi slt, %39, %c0_i32_16 : i32
    %47 = vector.broadcast %46 : i1 to vector<16x16xi1>
    %48 = vector.broadcast %47 : vector<16x16xi1> to vector<16x16xi1>
    %49 = arith.xori %45, %48 : vector<16x16xi1>
    %50 = arith.andi %49, %43 : vector<16x16xi1>
    %51 = vector.broadcast %39 : i32 to vector<16x16xi32>
    %52 = arith.addi %41, %51 : vector<16x16xi32>
    %53 = arith.select %50, %52, %41 : vector<16x16xi1>, vector<16x16xi32>
    %54 = arith.cmpi eq, %36, %53 : vector<16x16xi32>
    %55 = vector.extract_strided_slice %11 {offsets = [0, 0], sizes = [16, 8], strides = [1, 1]} : vector<16x64xf32> to vector<16x8xf32>
    %56 = vector.extract_strided_slice %11 {offsets = [0, 32], sizes = [16, 8], strides = [1, 1]} : vector<16x64xf32> to vector<16x8xf32>
    %57 = vector.extract_strided_slice %18 {offsets = [0, 0], sizes = [16, 8], strides = [1, 1]} : vector<16x32xf32> to vector<16x8xf32>
    %cst_17 = arith.constant dense<0.000000e+00> : vector<16x16xf32>
    %58 = tpu.matmul %55, %56, %cst_17 {dimension_numbers = #tpu.dot_dimension_numbers<[1], [1], [0], [0], [0, 0, 1, 0], [], []>} : vector<16x8xf32>, vector<16x8xf32>, vector<16x16xf32> -> vector<16x16xf32>
    %cst_18 = arith.constant -1.000000e+30 : f32
    %59 = vector.broadcast %cst_18 : f32 to vector<16x16xf32>
    %60 = arith.select %54, %58, %59 : vector<16x16xi1>, vector<16x16xf32>
    %cst_19 = arith.constant dense<0xFF800000> : vector<16xf32>
    %61 = vector.multi_reduction <maximumf>, %60, %cst_19 [1] : vector<16x16xf32> to vector<16xf32>
    %62 = vector.shape_cast %61 : vector<16xf32> to vector<16x1xf32>
    %63 = vector.broadcast %62 : vector<16x1xf32> to vector<16x16xf32>
    %64 = arith.subf %60, %63 : vector<16x16xf32>
    %65 = math.exp %64 : vector<16x16xf32>
    %cst_20 = arith.constant dense<0.000000e+00> : vector<16xf32>
    %66 = vector.multi_reduction <add>, %65, %cst_20 [1] : vector<16x16xf32> to vector<16xf32>
    %67 = vector.shape_cast %66 : vector<16xf32> to vector<16x1xf32>
    %68 = tpu.reciprocal %67 : vector<16x1xf32> -> vector<16x1xf32>
    %69 = vector.broadcast %68 : vector<16x1xf32> to vector<16x16xf32>
    %70 = arith.mulf %65, %69 : vector<16x16xf32>
    %cst_21 = arith.constant dense<0.000000e+00> : vector<16x8xf32>
    %71 = tpu.matmul %70, %57, %cst_21 {dimension_numbers = #tpu.dot_dimension_numbers<[1], [0], [0], [1], [0, 0, 1, 1], [], []>} : vector<16x16xf32>, vector<16x8xf32>, vector<16x8xf32> -> vector<16x8xf32>
    %72 = vector.extract_strided_slice %19 {offsets = [0, 0], sizes = [8, 32], strides = [1, 1]} : vector<32x32xf32> to vector<8x32xf32>
    %cst_22 = arith.constant dense<0.000000e+00> : vector<16x32xf32>
    %73 = tpu.matmul %71, %72, %cst_22 {dimension_numbers = #tpu.dot_dimension_numbers<[1], [0], [0], [1], [0, 0, 1, 1], [], []>} : vector<16x8xf32>, vector<8x32xf32>, vector<16x32xf32> -> vector<16x32xf32>
    %74 = vector.extract_strided_slice %11 {offsets = [0, 8], sizes = [16, 8], strides = [1, 1]} : vector<16x64xf32> to vector<16x8xf32>
    %75 = vector.extract_strided_slice %11 {offsets = [0, 40], sizes = [16, 8], strides = [1, 1]} : vector<16x64xf32> to vector<16x8xf32>
    %76 = vector.extract_strided_slice %18 {offsets = [0, 8], sizes = [16, 8], strides = [1, 1]} : vector<16x32xf32> to vector<16x8xf32>
    %cst_23 = arith.constant dense<0.000000e+00> : vector<16x16xf32>
    %77 = tpu.matmul %74, %75, %cst_23 {dimension_numbers = #tpu.dot_dimension_numbers<[1], [1], [0], [0], [0, 0, 1, 0], [], []>} : vector<16x8xf32>, vector<16x8xf32>, vector<16x16xf32> -> vector<16x16xf32>
    %cst_24 = arith.constant -1.000000e+30 : f32
    %78 = vector.broadcast %cst_24 : f32 to vector<16x16xf32>
    %79 = arith.select %54, %77, %78 : vector<16x16xi1>, vector<16x16xf32>
    %cst_25 = arith.constant dense<0xFF800000> : vector<16xf32>
    %80 = vector.multi_reduction <maximumf>, %79, %cst_25 [1] : vector<16x16xf32> to vector<16xf32>
    %81 = vector.shape_cast %80 : vector<16xf32> to vector<16x1xf32>
    %82 = vector.broadcast %81 : vector<16x1xf32> to vector<16x16xf32>
    %83 = arith.subf %79, %82 : vector<16x16xf32>
    %84 = math.exp %83 : vector<16x16xf32>
    %cst_26 = arith.constant dense<0.000000e+00> : vector<16xf32>
    %85 = vector.multi_reduction <add>, %84, %cst_26 [1] : vector<16x16xf32> to vector<16xf32>
    %86 = vector.shape_cast %85 : vector<16xf32> to vector<16x1xf32>
    %87 = tpu.reciprocal %86 : vector<16x1xf32> -> vector<16x1xf32>
    %88 = vector.broadcast %87 : vector<16x1xf32> to vector<16x16xf32>
    %89 = arith.mulf %84, %88 : vector<16x16xf32>
    %cst_27 = arith.constant dense<0.000000e+00> : vector<16x8xf32>
    %90 = tpu.matmul %89, %76, %cst_27 {dimension_numbers = #tpu.dot_dimension_numbers<[1], [0], [0], [1], [0, 0, 1, 1], [], []>} : vector<16x16xf32>, vector<16x8xf32>, vector<16x8xf32> -> vector<16x8xf32>
    %91 = vector.extract_strided_slice %19 {offsets = [8, 0], sizes = [8, 32], strides = [1, 1]} : vector<32x32xf32> to vector<8x32xf32>
    %cst_28 = arith.constant dense<0.000000e+00> : vector<16x32xf32>
    %92 = tpu.matmul %90, %91, %cst_28 {dimension_numbers = #tpu.dot_dimension_numbers<[1], [0], [0], [1], [0, 0, 1, 1], [], []>} : vector<16x8xf32>, vector<8x32xf32>, vector<16x32xf32> -> vector<16x32xf32>
    %93 = arith.addf %73, %92 : vector<16x32xf32>
    %94 = vector.extract_strided_slice %11 {offsets = [0, 16], sizes = [16, 8], strides = [1, 1]} : vector<16x64xf32> to vector<16x8xf32>
    %95 = vector.extract_strided_slice %11 {offsets = [0, 48], sizes = [16, 8], strides = [1, 1]} : vector<16x64xf32> to vector<16x8xf32>
    %96 = vector.extract_strided_slice %18 {offsets = [0, 16], sizes = [16, 8], strides = [1, 1]} : vector<16x32xf32> to vector<16x8xf32>
    %cst_29 = arith.constant dense<0.000000e+00> : vector<16x16xf32>
    %97 = tpu.matmul %94, %95, %cst_29 {dimension_numbers = #tpu.dot_dimension_numbers<[1], [1], [0], [0], [0, 0, 1, 0], [], []>} : vector<16x8xf32>, vector<16x8xf32>, vector<16x16xf32> -> vector<16x16xf32>
    %cst_30 = arith.constant -1.000000e+30 : f32
    %98 = vector.broadcast %cst_30 : f32 to vector<16x16xf32>
    %99 = arith.select %54, %97, %98 : vector<16x16xi1>, vector<16x16xf32>
    %cst_31 = arith.constant dense<0xFF800000> : vector<16xf32>
    %100 = vector.multi_reduction <maximumf>, %99, %cst_31 [1] : vector<16x16xf32> to vector<16xf32>
    %101 = vector.shape_cast %100 : vector<16xf32> to vector<16x1xf32>
    %102 = vector.broadcast %101 : vector<16x1xf32> to vector<16x16xf32>
    %103 = arith.subf %99, %102 : vector<16x16xf32>
    %104 = math.exp %103 : vector<16x16xf32>
    %cst_32 = arith.constant dense<0.000000e+00> : vector<16xf32>
    %105 = vector.multi_reduction <add>, %104, %cst_32 [1] : vector<16x16xf32> to vector<16xf32>
    %106 = vector.shape_cast %105 : vector<16xf32> to vector<16x1xf32>
    %107 = tpu.reciprocal %106 : vector<16x1xf32> -> vector<16x1xf32>
    %108 = vector.broadcast %107 : vector<16x1xf32> to vector<16x16xf32>
    %109 = arith.mulf %104, %108 : vector<16x16xf32>
    %cst_33 = arith.constant dense<0.000000e+00> : vector<16x8xf32>
    %110 = tpu.matmul %109, %96, %cst_33 {dimension_numbers = #tpu.dot_dimension_numbers<[1], [0], [0], [1], [0, 0, 1, 1], [], []>} : vector<16x16xf32>, vector<16x8xf32>, vector<16x8xf32> -> vector<16x8xf32>
    %111 = vector.extract_strided_slice %19 {offsets = [16, 0], sizes = [8, 32], strides = [1, 1]} : vector<32x32xf32> to vector<8x32xf32>
    %cst_34 = arith.constant dense<0.000000e+00> : vector<16x32xf32>
    %112 = tpu.matmul %110, %111, %cst_34 {dimension_numbers = #tpu.dot_dimension_numbers<[1], [0], [0], [1], [0, 0, 1, 1], [], []>} : vector<16x8xf32>, vector<8x32xf32>, vector<16x32xf32> -> vector<16x32xf32>
    %113 = arith.addf %93, %112 : vector<16x32xf32>
    %114 = vector.extract_strided_slice %11 {offsets = [0, 24], sizes = [16, 8], strides = [1, 1]} : vector<16x64xf32> to vector<16x8xf32>
    %115 = vector.extract_strided_slice %11 {offsets = [0, 56], sizes = [16, 8], strides = [1, 1]} : vector<16x64xf32> to vector<16x8xf32>
    %116 = vector.extract_strided_slice %18 {offsets = [0, 24], sizes = [16, 8], strides = [1, 1]} : vector<16x32xf32> to vector<16x8xf32>
    %cst_35 = arith.constant dense<0.000000e+00> : vector<16x16xf32>
    %117 = tpu.matmul %114, %115, %cst_35 {dimension_numbers = #tpu.dot_dimension_numbers<[1], [1], [0], [0], [0, 0, 1, 0], [], []>} : vector<16x8xf32>, vector<16x8xf32>, vector<16x16xf32> -> vector<16x16xf32>
    %cst_36 = arith.constant -1.000000e+30 : f32
    %118 = vector.broadcast %cst_36 : f32 to vector<16x16xf32>
    %119 = arith.select %54, %117, %118 : vector<16x16xi1>, vector<16x16xf32>
    %cst_37 = arith.constant dense<0xFF800000> : vector<16xf32>
    %120 = vector.multi_reduction <maximumf>, %119, %cst_37 [1] : vector<16x16xf32> to vector<16xf32>
    %121 = vector.shape_cast %120 : vector<16xf32> to vector<16x1xf32>
    %122 = vector.broadcast %121 : vector<16x1xf32> to vector<16x16xf32>
    %123 = arith.subf %119, %122 : vector<16x16xf32>
    %124 = math.exp %123 : vector<16x16xf32>
    %cst_38 = arith.constant dense<0.000000e+00> : vector<16xf32>
    %125 = vector.multi_reduction <add>, %124, %cst_38 [1] : vector<16x16xf32> to vector<16xf32>
    %126 = vector.shape_cast %125 : vector<16xf32> to vector<16x1xf32>
    %127 = tpu.reciprocal %126 : vector<16x1xf32> -> vector<16x1xf32>
    %128 = vector.broadcast %127 : vector<16x1xf32> to vector<16x16xf32>
    %129 = arith.mulf %124, %128 : vector<16x16xf32>
    %cst_39 = arith.constant dense<0.000000e+00> : vector<16x8xf32>
    %130 = tpu.matmul %129, %116, %cst_39 {dimension_numbers = #tpu.dot_dimension_numbers<[1], [0], [0], [1], [0, 0, 1, 1], [], []>} : vector<16x16xf32>, vector<16x8xf32>, vector<16x8xf32> -> vector<16x8xf32>
    %131 = vector.extract_strided_slice %19 {offsets = [24, 0], sizes = [8, 32], strides = [1, 1]} : vector<32x32xf32> to vector<8x32xf32>
    %cst_40 = arith.constant dense<0.000000e+00> : vector<16x32xf32>
    %132 = tpu.matmul %130, %131, %cst_40 {dimension_numbers = #tpu.dot_dimension_numbers<[1], [0], [0], [1], [0, 0, 1, 1], [], []>} : vector<16x8xf32>, vector<8x32xf32>, vector<16x32xf32> -> vector<16x32xf32>
    %133 = arith.addf %113, %132 : vector<16x32xf32>
    %134 = vector.extract_strided_slice %4 {offsets = [1, 0], sizes = [1, 32], strides = [1, 1]} : vector<2x96xf32> to vector<1x32xf32>
    %135 = vector.shape_cast %134 : vector<1x32xf32> to vector<32xf32>
    %136 = vector.shape_cast %135 : vector<32xf32> to vector<1x32xf32>
    %137 = vector.broadcast %136 : vector<1x32xf32> to vector<16x32xf32>
    %138 = arith.addf %133, %137 : vector<16x32xf32>
    %139 = arith.addf %0, %138 : vector<16x32xf32>
    %cst_41 = arith.constant dense<0.000000e+00> : vector<16xf32>
    %140 = vector.multi_reduction <add>, %139, %cst_41 [1] : vector<16x32xf32> to vector<16xf32>
    %141 = vector.shape_cast %140 : vector<16xf32> to vector<16x1xf32>
    %cst_42 = arith.constant 3.200000e+01 : f32
    %142 = vector.broadcast %cst_42 : f32 to vector<16x1xf32>
    %143 = arith.divf %141, %142 : vector<16x1xf32>
    %144 = vector.broadcast %143 : vector<16x1xf32> to vector<16x32xf32>
    %145 = arith.subf %139, %144 : vector<16x32xf32>
    %146 = arith.mulf %145, %145 : vector<16x32xf32>
    %cst_43 = arith.constant dense<0.000000e+00> : vector<16xf32>
    %147 = vector.multi_reduction <add>, %146, %cst_43 [1] : vector<16x32xf32> to vector<16xf32>
    %148 = vector.shape_cast %147 : vector<16xf32> to vector<16x1xf32>
    %cst_44 = arith.constant 3.200000e+01 : f32
    %149 = vector.broadcast %cst_44 : f32 to vector<16x1xf32>
    %150 = arith.divf %148, %149 : vector<16x1xf32>
    %cst_45 = arith.constant 9.99999974E-6 : f32
    %151 = vector.broadcast %cst_45 : f32 to vector<16x1xf32>
    %152 = arith.addf %150, %151 : vector<16x1xf32>
    %153 = math.rsqrt %152 : vector<16x1xf32>
    %154 = vector.broadcast %153 : vector<16x1xf32> to vector<16x32xf32>
    %155 = arith.mulf %145, %154 : vector<16x32xf32>
    %156 = vector.extract_strided_slice %4 {offsets = [1, 32], sizes = [1, 32], strides = [1, 1]} : vector<2x96xf32> to vector<1x32xf32>
    %157 = vector.shape_cast %156 : vector<1x32xf32> to vector<32xf32>
    %158 = vector.shape_cast %157 : vector<32xf32> to vector<1x32xf32>
    %159 = vector.broadcast %158 : vector<1x32xf32> to vector<16x32xf32>
    %160 = arith.mulf %155, %159 : vector<16x32xf32>
    %161 = vector.extract_strided_slice %4 {offsets = [1, 64], sizes = [1, 32], strides = [1, 1]} : vector<2x96xf32> to vector<1x32xf32>
    %162 = vector.shape_cast %161 : vector<1x32xf32> to vector<32xf32>
    %163 = vector.shape_cast %162 : vector<32xf32> to vector<1x32xf32>
    %164 = vector.broadcast %163 : vector<1x32xf32> to vector<16x32xf32>
    %165 = arith.addf %160, %164 : vector<16x32xf32>
    %c0_46 = arith.constant 0 : index
    %c0_47 = arith.constant 0 : index
    %166 = vector.load %arg5[%c0_46, %c0_47] : memref<16x32xf32, #tpu.memory_space<vmem>>, vector<16x32xf32>
    tpu.vector_store %arg5[%c0_46, %c0_47], %165 {strides = array<i32>} : memref<16x32xf32, #tpu.memory_space<vmem>>, vector<16x32xf32>,
    return
  }
  func.func @transform_0(%arg0: i32) -> (i32, i32) {
    %c0_i32 = arith.constant 0 : i32
    %c0_i32_0 = arith.constant 0 : i32
    %c0_i32_1 = arith.constant 0 : i32
    return %c0_i32, %c0_i32_0 : i32, i32
  }
  func.func @transform_1(%arg0: i32) -> (i32, i32) {
    %c0_i32 = arith.constant 0 : i32
    %c0_i32_0 = arith.constant 0 : i32
    %c0_i32_1 = arith.constant 0 : i32
    return %c0_i32, %c0_i32_0 : i32, i32
  }
  func.func @transform_2(%arg0: i32) -> (i32, i32) {
    %c0_i32 = arith.constant 0 : i32
    %c0_i32_0 = arith.constant 0 : i32
    %c0_i32_1 = arith.constant 0 : i32
    return %c0_i32, %c0_i32_0 : i32, i32
  }
  func.func @transform_3(%arg0: i32) -> (i32, i32) {
    %c0_i32 = arith.constant 0 : i32
    %c0_i32_0 = arith.constant 0 : i32
    %c0_i32_1 = arith.constant 0 : i32
    return %c0_i32, %c0_i32_0 : i32, i32
  }
  func.func @transform_4(%arg0: i32) -> (i32, i32) {
    %c0_i32 = arith.constant 0 : i32
    %c0_i32_0 = arith.constant 0 : i32
    %c0_i32_1 = arith.constant 0 : i32
    return %c0_i32, %c0_i32_0 : i32, i32
  }
}

</mosaic_0001>

<bundles_post_ra>
// kernel: self_attention_layer.1
= control target key start
LH: loop header
LB: loop body
LE: loop exit
PB: predicated region body
PF: predicated region fallthrough
CT: control target
= control target key end

     0   :  { %s1319_s0 = inlined_call_operand.vmem [shape: f32[16,32], index: 0, kind: input, shape index: {}]   ;;  %s1320_s1 = inlined_call_operand.vmem [shape: f32[16,32], index: 1, kind: input, shape index: {}]   ;;  %s1321_s2 = inlined_call_operand.vmem [shape: f32[32,128], index: 2, kind: input, shape index: {}]   ;;  %s1322_s3 = inlined_call_operand.vmem [shape: f32[2,96], index: 3, kind: input, shape index: {}]   ;;  %s1323_s4 = inlined_call_operand.hbm [shape: f32[16,32], index: 4, kind: output, shape index: {}]  }
   0x1   :  { %v1053_v0 = vld [vmem:[%s1321_s2 + $0x18] sm:$0xff]  ;;  %v1058_v1 = vld [vmem:[%s1321_s2 + $0x10] sm:$0xff]  ;;  %v1064_v2 = vld [vmem:[%s1319_s0 + $0x8] sm:$0xff] }
   0x2   :  { %899 = vmatpush.msra.mxu1 %v1053_v0  ;;  %v21_v3 = vld [vmem:[%s1320_s1 + $0x8] sm:$0xff]  ;;  %49 = vmatpush.msra.mxu0 %v1053_v0  ;;  %v1078_v5 = vld [vmem:[%s1319_s0] sm:$0xff] }
   0x3   :  { %v1073_v4 = vld [vmem:[%s1321_s2 + $0x8] sm:$0xff]  ;;  %v20_v6 = vld [vmem:[%s1320_s1] sm:$0xff] }
   0x4   :  { %900 = vmatpush.msra.mxu1 %v1058_v1  ;;  %50 = vmatpush.msra.mxu0 %v1058_v1 }
   0x5   :  { %9 = vsyncpa [#allocation3], 0  ;;  %v1088_v7 = vld [vmem:[%s1321_s2] sm:$0xff]  ;;  %v23_v8 = vadd.f32 %v21_v3, %v1064_v2  ;;  %v22_v9 = vadd.f32 %v20_v6, %v1078_v5  ;;  %vm30_vm0 = vcmask 261120   ;;  %s1012_s2 = smov 96   ;;  %v918_v16 = vpack.i.bf16 %v1058_v1, %v1053_v0  ;;  %s1014_s5 = smov 88  }
   0x6   :  { %901 = vmatpush.msra.mxu1 %v1073_v4  ;;  %51 = vmatpush.msra.mxu0 %v1073_v4  ;;  %v1101_v10 = vld [vmem:[%s1322_s3] sm:$0x3]  ;;  %s1013_s3 = smov 64   ;;  %v923_v17 = vpack.i.bf16 %v1088_v7, %v1073_v4  ;;  %vm158_vm1 = vcmask 64512   ;;  %v109_v26 = vlaneseq  ;;  %vm192_vm3 = vcmask 130048   ;;  %s1015_s6 = smov 32  }
   0x7   :  { %v29_v11 = vperm.slane %v1101_v10, 0  ;;  %919 = vrot.lane.b32.xlu1 %v918_v16, %s1013_s3  ;;  %s1016_s7 = smov 120   ;;  %s1017_s8 = smov 80  }
   0x8   :  { %902 = vmatpush.msra.mxu1 %v1088_v7  ;;  %52 = vmatpush.msra.mxu0 %v1088_v7  ;;  %v110_v27 = vshrl.u32 %v109_v26, 7  ;;  %v137_v28 = vand.u32 127, %v109_v26  ;;  %s1018_s9 = smov 104   ;;  %s1019_s10 = smov 72  }
   0x9   :  { %864 = vmatmul.msk.f32.vlgmr.msra.gmra.mxu1 %vm30_vm0, %v23_v8  ;;  %863 = vmatmul.msk.f32.vlgmr.msra.gmra.mxu0 %vm30_vm0, %v22_v9  ;;  %s1020_s11 = smov 112   ;;  %s1022_s12 = smov [#allocation2]  }
   0xa   :  { %v116_v29 = vand.u32 1, %v110_v27  ;;  %v142_v30 = vand.u32 1, %v137_v28  ;;  %v111_v32 = vadd.s32 8, %v110_v27  ;;  %s849_s13 = sshll.u32 %s1022_s12, 4  ;;  %s851_s16 = sshll.u32 %s1323_s4, 4  ;;  %s850_s13 = int_to_ptr.vmem [resolvable:$true] %s849_s13  ;;  %s852_s16 = int_to_ptr.hbm [resolvable:$true] %s851_s16 }
   0xb   :  { %s1023_s17 = smov 128   ;;  %s1024_s18 = smov 8  }
   0xc   :  { %vm1128_vm2 = vcmp.eq.s32.totalorder %v116_v29, %v142_v30  ;;  %v123_v36 = vand.u32 1, %v111_v32 }
   0xe   :  { %vm1135_vm4 = vcmp.eq.s32.totalorder %v123_v36, %v142_v30 }
   0xf   :  { %924 = vrot.lane.b32.xlu1 %v923_v17, %s1013_s3 }
  0x79   :  { %v920_v20 = vpop.permute.xlu1 %919 }
  0x7a   :  { %v921_v21 = vunpack.i.l.bf16 %v920_v20  ;;  %v922_v22 = vunpack.i.h.bf16 %v920_v20 }
  0x7c   :  { %98 = vmatpush.msrb.mxu1 %v921_v21 }
  0x7e   :  { %99 = vmatpush.msrb.mxu1 %v922_v22 }
  0x81   :  { %v925_v23 = vpop.permute.xlu1 %924 }
  0x82   :  { %v926_v24 = vunpack.i.l.bf16 %v925_v23  ;;  %v927_v25 = vunpack.i.h.bf16 %v925_v23 }
  0x84   :  { %100 = vmatpush.msrb.mxu1 %v926_v24 }
  0x86   :  { %v57_v12 = vpop.f32.mrf.mxu1  ;;  %v54_v14 = vpop.f32.mrf.mxu0  ;;  %101 = vmatpush.msrb.mxu1 %v927_v25 }
  0x87   :  { %v1104_v13 = vadd.f32 %v57_v12, %v29_v11  ;;  %v1108_v15 = vadd.f32 %v54_v14, %v29_v11  ;;  %865 = vmatmul.msk.f32.vlgmr.msrb.gmra.mxu1 %vm30_vm0, %v1078_v5 }
  0x89   :  { %156 = vrot.lane.b32.xlu0 %v1104_v13, %s1012_s2 }
  0x8f   :  { %866 = vmatmul.msk.f32.gmra.mxu1 %vm30_vm0, %v1064_v2 }
  0x91   :  { %154 = vrot.lane.b32.xlu0 %v1108_v15, %s1012_s2 }
  0xfb   :  { %v157_v18 = vpop.permute.xlu0 %156 }
  0xfc   :  { %867 = vmatpush.xpose.msk.msra.mxu2 %vm158_vm1, %v157_v18 }
 0x103   :  { %v155_v19 = vpop.permute.xlu0 %154 }
 0x104   :  { %868 = vmatpush.xpose.msk.msra.mxu2 %vm158_vm1, %v155_v19  ;;  %v103_v44 = vpop.f32.mrf.mxu1 }
 0x107   :  { %869 = vmatmul.msk.f32.vlgmr.msra.gmra.mxu2 %vm158_vm1, %v1108_v15 }
 0x10c   :  { %v106_v50 = vpop.f32.mrf.mxu1 }
 0x10f   :  { %870 = vmatmul.msk.f32.gmra.mxu2 %vm158_vm1, %v1104_v13 }
 0x18a   :  { %v184_v33 = vpop.f32.mrf.mxu2 }
 0x18b   :  { %v190_v34 = vsel %vm1128_vm2, %v184_v33, -1e+30 }
 0x18c   :  { %v193_v35 = vsel %vm192_vm3, %v190_v34, -inf }
 0x18d   :  { %194 = vmax.xlane.f32.xlu2 %v193_v35 }
 0x192   :  { %v187_v38 = vpop.f32.mrf.mxu2 }
 0x193   :  { %v191_v39 = vsel %vm1135_vm4, %v187_v38, -1e+30 }
 0x194   :  { %v196_v40 = vsel %vm192_vm3, %v191_v39, -inf }
 0x195   :  { %197 = vmax.xlane.f32.xlu2 %v196_v40 }
 0x1ad   :  { %77 = vrot.lane.b32.xlu2 %v29_v11, %s1013_s3 }
 0x1b5   :  { %276 = vrot.lane.b32.xlu2 %v1104_v13, %s1014_s5 }
 0x1bd   :  { %428 = vrot.lane.b32.xlu2 %v1088_v7, %s1015_s6 }
 0x1c5   :  { %274 = vrot.lane.b32.xlu2 %v1108_v15, %s1014_s5 }
 0x1cd   :  { %272 = vrot.lane.b32.xlu2 %v1104_v13, %s1016_s7 }
 0x1d5   :  { %466 = vrot.lane.b32.xlu2 %v1104_v13, %s1017_s8 }
 0x1dd   :  { %618 = vrot.lane.b32.xlu2 %v1108_v15, %s1018_s9 }
 0x1e5   :  { %620 = vrot.lane.b32.xlu2 %v1104_v13, %s1018_s9 }
 0x200   :  { %v195_v41 = vpop.xlane.xlu2 %194 }
 0x201   :  { %v199_v42 = vsub.f32 %v190_v34, %v195_v41 }
 0x203   :  { %v201_v43 = vmul.f32 1.442695, %v199_v42 }
 0x205   :  { %948 = vpow2.f32 %v201_v43 }
 0x208   :  { %v198_v45 = vpop.xlane.xlu2 %197 }
 0x209   :  { %v200_v46 = vsub.f32 %v191_v39, %v198_v45 }
 0x20b   :  { %v949_v47 = vpop.eup %948  ;;  %v203_v48 = vmul.f32 1.442695, %v200_v46 }
 0x20c   :  { %v205_v49 = vsel %vm192_vm3, %v949_v47, 0.0 }
 0x20d   :  { %950 = vpow2.f32 %v203_v48  ;;  %206 = vadd.xlane.f32.xlu0 %v205_v49 }
 0x210   :  { %v78_v51 = vpop.permute.xlu2 %77 }
 0x211   :  { %v1156_v52 = vadd.f32 %v103_v44, %v78_v51  ;;  %v1158_v53 = vadd.f32 %v106_v50, %v78_v51 }
 0x213   :  { %v951_v54 = vpop.eup %950  ;;  %903 = vmatpush.msra.mxu3 %v1158_v53  ;;  %261 = vmatpush.msrb.mxu2 %v1158_v53  ;;  %v1227_v37 = vpack.i.bf16 %v1156_v52, %v1158_v53 }
 0x214   :  { %v208_v55 = vsel %vm192_vm3, %v951_v54, 0.0 }
 0x215   :  { %209 = vadd.xlane.f32.xlu1 %v208_v55  ;;  %904 = vmatpush.msra.mxu3 %v1156_v52 }
 0x216   :  { %262 = vmatpush.msrb.mxu2 %v1156_v52 }
 0x218   :  { %v277_v56 = vpop.permute.xlu2 %276 }
 0x219   :  { %873 = vmatpush.xpose.msk.msrb.mxu3 %vm158_vm1, %v277_v56 }
 0x220   :  { %v429_v57 = vpop.permute.xlu2 %428 }
 0x221   :  { %270 = vrot.lane.b32.xlu0 %v1108_v15, %s1016_s7  ;;  %452 = vmatpush.msra.mxu2 %v429_v57 }
 0x228   :  { %v275_v58 = vpop.permute.xlu2 %274 }
 0x229   :  { %622 = vrot.lane.b32.xlu0 %v1108_v15, %s1019_s10  ;;  %874 = vmatpush.xpose.msk.msrb.mxu3 %vm158_vm1, %v275_v58 }
 0x22e   :  { %624 = vrot.lane.b32.xlu1 %v1104_v13, %s1019_s10 }
 0x231   :  { %460 = vrot.lane.b32.xlu0 %v1108_v15, %s1020_s11 }
 0x236   :  { %464 = vrot.lane.b32.xlu1 %v1108_v15, %s1017_s8  ;;  %v273_v15 = vpop.permute.xlu2 %272 }
 0x23e   :  { %462 = vrot.lane.b32.xlu1 %v1104_v13, %s1020_s11  ;;  %v467_v27 = vpop.permute.xlu2 %466 }
 0x246   :  { %v619_v36 = vpop.permute.xlu2 %618 }
 0x24e   :  { %v621_v41 = vpop.permute.xlu2 %620 }
 0x280   :  { %v207_v59 = vpop.xlane.xlu0 %206 }
 0x281   :  { %952 = vrcp.f32 %v207_v59  ;;  %v222_v3 = vand.u32 2147483648, %v207_v59  ;;  %v220_v7 = vand.u32 2147483647, %v207_v59  ;;  %vm216_vm6 = vweird.f32 %v207_v59 }
 0x283   :  { %v223_v11 = vor.u32 1.1754944e-38, %v222_v3  ;;  %vm221_vm8 = vcmp.eq.f32.partialorder %v220_v7, 8.507059e+37 }
 0x287   :  { %v953_v60 = vpop.eup %952 }
 0x288   :  { %v212_v61 = vmul.f32 %v953_v60, %v207_v59  ;;  %v210_v62 = vpop.xlane.xlu1 %209  ;;  %vm217_vm5 = vweird.f32 %v953_v60 }
 0x289   :  { %954 = vrcp.f32 %v210_v62  ;;  %vm218_vm7 = vmor %vm216_vm6, %vm217_vm5  ;;  %v236_v18 = vand.u32 2147483648, %v210_v62  ;;  %v234_v20 = vand.u32 2147483647, %v210_v62  ;;  %vm230_vm10 = vweird.f32 %v210_v62 }
 0x28a   :  { %v213_v63 = vsub.f32 1.0, %v212_v61 }
 0x28b   :  { %v237_v22 = vor.u32 1.1754944e-38, %v236_v18  ;;  %vm235_vm12 = vcmp.eq.f32.partialorder %v234_v20, 8.507059e+37 }
 0x28c   :  { %v214_v6 = vmul.f32 %v953_v60, %v213_v63 }
 0x28e   :  { %v215_v8 = vadd.f32 %v953_v60, %v214_v6 }
 0x28f   :  { %v955_v9 = vpop.eup %954 }
 0x290   :  { %v226_v12 = vmul.f32 %v955_v9, %v210_v62  ;;  %v219_v14 = vsel %vm218_vm7, %v953_v60, %v215_v8  ;;  %vm231_vm9 = vweird.f32 %v955_v9 }
 0x291   :  { %v224_v13 = vsel %vm221_vm8, %v223_v11, %v219_v14  ;;  %vm232_vm11 = vmor %vm230_vm10, %vm231_vm9 }
 0x292   :  { %v227_v16 = vsub.f32 1.0, %v226_v12  ;;  %v239_v17 = vmul.f32 %v949_v47, %v224_v13 }
 0x293   :  { %v271_v25 = vpop.permute.xlu0 %270 }
 0x294   :  { %v228_v19 = vmul.f32 %v955_v9, %v227_v16  ;;  %871 = vmatmul.msk.f32.vlgmr.msrb.gmra.mxu2 %vm192_vm3, %v239_v17 }
 0x296   :  { %v229_v21 = vadd.f32 %v955_v9, %v228_v19 }
 0x298   :  { %v233_v23 = vsel %vm232_vm11, %v955_v9, %v229_v21 }
 0x299   :  { %v238_v24 = vsel %vm235_vm12, %v237_v22, %v233_v23 }
 0x29a   :  { %v240_v26 = vmul.f32 %v951_v54, %v238_v24 }
 0x29b   :  { %v623_v29 = vpop.permute.xlu0 %622 }
 0x29c   :  { %872 = vmatmul.msk.f32.vlgmr.msra.gmra.mxu3 %vm192_vm3, %v240_v26 }
 0x29d   :  { %883 = vmatpush.xpose.msk.msra.mxu3 %vm158_vm1, %v467_v27 }
 0x2a0   :  { %v625_v28 = vpop.permute.xlu1 %624 }
 0x2a1   :  { %891 = vmatpush.xpose.msk.msrb.mxu2 %vm158_vm1, %v625_v28 }
 0x2a3   :  { %v461_v32 = vpop.permute.xlu0 %460 }
 0x2a4   :  { %875 = vmatmul.msk.f32.vlgmr.msrb.gmra.mxu3 %vm158_vm1, %v271_v25 }
 0x2a5   :  { %892 = vmatpush.xpose.msk.msrb.mxu2 %vm158_vm1, %v623_v29 }
 0x2a8   :  { %v465_v30 = vpop.permute.xlu1 %464 }
 0x2a9   :  { %884 = vmatpush.xpose.msk.msra.mxu3 %vm158_vm1, %v465_v30 }
 0x2ac   :  { %876 = vmatmul.msk.f32.gmra.mxu3 %vm158_vm1, %v273_v15 }
 0x2b0   :  { %v463_v33 = vpop.permute.xlu1 %462 }
 0x2b4   :  { %885 = vmatmul.msk.f32.vlgmr.msra.gmra.mxu3 %vm158_vm1, %v461_v32 }
 0x2bc   :  { %886 = vmatmul.msk.f32.gmra.mxu3 %vm158_vm1, %v463_v33 }
 0x317   :  { %v264_v34 = vpop.f32.mrf.mxu2 }
 0x318   :  { %881 = vmatmul.msk.f32.vlgmr.msra.gmra.mxu2 %vm158_vm1, %v264_v34 }
 0x31f   :  { %v267_v35 = vpop.f32.mrf.mxu3 }
 0x320   :  { %882 = vmatmul.msk.f32.gmra.mxu2 %vm158_vm1, %v267_v35 }
 0x327   :  { %v303_v38 = vpop.f32.mrf.mxu3 }
 0x328   :  { %v309_v39 = vsel %vm1128_vm2, %v303_v38, -1e+30  ;;  %893 = vmatmul.msk.f32.vlgmr.msrb.gmra.mxu2 %vm158_vm1, %v619_v36 }
 0x329   :  { %v311_v40 = vsel %vm192_vm3, %v309_v39, -inf }
 0x32a   :  { %312 = vmax.xlane.f32.xlu0 %v311_v40 }
 0x32f   :  { %v306_v42 = vpop.f32.mrf.mxu3 }
 0x330   :  { %v310_v43 = vsel %vm1135_vm4, %v306_v42, -1e+30  ;;  %894 = vmatmul.msk.f32.gmra.mxu2 %vm158_vm1, %v621_v41 }
 0x331   :  { %v314_v44 = vsel %vm192_vm3, %v310_v43, -inf }
 0x332   :  { %315 = vmax.xlane.f32.xlu2 %v314_v44 }
 0x337   :  { %v493_v45 = vpop.f32.mrf.mxu3 }
 0x338   :  { %v499_v46 = vsel %vm1128_vm2, %v493_v45, -1e+30 }
 0x339   :  { %v501_v47 = vsel %vm192_vm3, %v499_v46, -inf }
 0x33a   :  { %502 = vmax.xlane.f32.xlu0 %v501_v47 }
 0x33f   :  { %v496_v3 = vpop.f32.mrf.mxu3 }
 0x340   :  { %v500_v8 = vsel %vm1135_vm4, %v496_v3, -1e+30 }
 0x341   :  { %v504_v31 = vsel %vm192_vm3, %v500_v8, -inf }
 0x39b   :  { %v1200_v48 = vpop.f32.mrf.mxu2 }
 0x39d   :  { %v313_v49 = vpop.xlane.xlu0 %312 }
 0x39e   :  { %v317_v50 = vsub.f32 %v309_v39, %v313_v49 }
 0x3a0   :  { %v319_v51 = vmul.f32 1.442695, %v317_v50 }
 0x3a2   :  { %956 = vpow2.f32 %v319_v51 }
 0x3a3   :  { %v1202_v54 = vpop.f32.mrf.mxu2 }
 0x3a5   :  { %v316_v56 = vpop.xlane.xlu2 %315 }
 0x3a6   :  { %v318_v59 = vsub.f32 %v310_v43, %v316_v56 }
 0x3a8   :  { %v1204_v55 = vpop.eup %956  ;;  %v321_v6 = vmul.f32 1.442695, %v318_v59 }
 0x3a9   :  { %v323_v57 = vsel %vm192_vm3, %v1204_v55, 0.0 }
 0x3aa   :  { %324 = vadd.xlane.f32.xlu0 %v323_v57 }
 0x3ab   :  { %v651_v58 = vpop.f32.mrf.mxu2 }
 0x3ac   :  { %v657_v60 = vsel %vm1128_vm2, %v651_v58, -1e+30 }
 0x3ad   :  { %v503_v61 = vpop.xlane.xlu0 %502  ;;  %v659_v62 = vsel %vm192_vm3, %v657_v60, -inf }
 0x3ae   :  { %v507_v63 = vsub.f32 %v499_v46, %v503_v61  ;;  %660 = vmax.xlane.f32.xlu1 %v659_v62 }
 0x3b0   :  { %v509_v7 = vmul.f32 1.442695, %v507_v63 }
 0x3b2   :  { %958 = vpow2.f32 %v509_v7 }
 0x3b3   :  { %v654_v9 = vpop.f32.mrf.mxu2  ;;  %960 = vpow2.f32 %v321_v6 }
 0x3b4   :  { %v658_v11 = vsel %vm1135_vm4, %v654_v9, -1e+30 }
 0x3b5   :  { %v662_v12 = vsel %vm192_vm3, %v658_v11, -inf }
 0x3b6   :  { %505 = vmax.xlane.f32.xlu1 %v504_v31  ;;  %663 = vmax.xlane.f32.xlu2 %v662_v12 }
 0x3b8   :  { %v1217_v14 = vpop.eup %958 }
 0x3b9   :  { %v513_v13 = vsel %vm192_vm3, %v1217_v14, 0.0  ;;  %v1221_v15 = vpop.eup %960 }
 0x3ba   :  { %514 = vadd.xlane.f32.xlu0 %v513_v13  ;;  %v326_v16 = vsel %vm192_vm3, %v1221_v15, 0.0 }
 0x3be   :  { %327 = vadd.xlane.f32.xlu2 %v326_v16 }
 0x3d6   :  { %929 = vrot.lane.b32.xlu2 %v1227_v37, %s1016_s7 }
 0x3de   :  { %396 = vrot.lane.b32.xlu2 %v1073_v4, %s1015_s6 }
 0x41d   :  { %v325_v17 = vpop.xlane.xlu0 %324 }
 0x41e   :  { %962 = vrcp.f32 %v325_v17  ;;  %v340_v34 = vand.u32 2147483648, %v325_v17  ;;  %vm334_vm14 = vweird.f32 %v325_v17  ;;  %v338_v36 = vand.u32 2147483647, %v325_v17 }
 0x420   :  { %v341_v42 = vor.u32 1.1754944e-38, %v340_v34  ;;  %vm339_vm2 = vcmp.eq.f32.partialorder %v338_v36, 8.507059e+37 }
 0x421   :  { %v661_v18 = vpop.xlane.xlu1 %660 }
 0x422   :  { %v665_v19 = vsub.f32 %v657_v60, %v661_v18 }
 0x424   :  { %v963_v20 = vpop.eup %962  ;;  %v667_v21 = vmul.f32 1.442695, %v665_v19 }
 0x425   :  { %v330_v22 = vmul.f32 %v963_v20, %v325_v17  ;;  %vm335_vm13 = vweird.f32 %v963_v20 }
 0x426   :  { %964 = vpow2.f32 %v667_v21  ;;  %vm336_vm15 = vmor %vm334_vm14, %vm335_vm13 }
 0x427   :  { %v331_v52 = vsub.f32 1.0, %v330_v22 }
 0x429   :  { %v506_v23 = vpop.xlane.xlu1 %505  ;;  %v664_v24 = vpop.xlane.xlu2 %663  ;;  %v332_v29 = vmul.f32 %v963_v20, %v331_v52 }
 0x42a   :  { %v508_v25 = vsub.f32 %v500_v8, %v506_v23  ;;  %v666_v26 = vsub.f32 %v658_v11, %v664_v24 }
 0x42b   :  { %v333_v32 = vadd.f32 %v963_v20, %v332_v29 }
 0x42c   :  { %v1233_v53 = vpop.eup %964  ;;  %v511_v27 = vmul.f32 1.442695, %v508_v25  ;;  %v669_v28 = vmul.f32 1.442695, %v666_v26 }
 0x42d   :  { %v671_v4 = vsel %vm192_vm3, %v1233_v53, 0.0  ;;  %v337_v40 = vsel %vm336_vm15, %v963_v20, %v333_v32  ;;  %v515_v63 = vpop.xlane.xlu0 %514 }
 0x42e   :  { %966 = vpow2.f32 %v511_v27  ;;  %672 = vadd.xlane.f32.xlu1 %v671_v4  ;;  %v342_v46 = vsel %vm339_vm2, %v341_v42, %v337_v40  ;;  %v530_v20 = vand.u32 2147483648, %v515_v63  ;;  %vm524_vm9 = vweird.f32 %v515_v63 }
 0x42f   :  { %968 = vpow2.f32 %v669_v28  ;;  %v357_v56 = vmul.f32 %v1204_v55, %v342_v46  ;;  %v528_v22 = vand.u32 2147483647, %v515_v63 }
 0x431   :  { %v328_v30 = vpop.xlane.xlu2 %327  ;;  %vm529_vm11 = vcmp.eq.f32.partialorder %v528_v22, 8.507059e+37 }
 0x432   :  { %970 = vrcp.f32 %v328_v30  ;;  %v354_v49 = vand.u32 2147483648, %v328_v30  ;;  %v352_v57 = vand.u32 2147483647, %v328_v30  ;;  %vm348_vm5 = vweird.f32 %v328_v30 }
 0x433   :  { %972 = vrcp.f32 %v515_v63 }
 0x434   :  { %v1237_v33 = vpop.eup %966  ;;  %v355_v59 = vor.u32 1.1754944e-38, %v354_v49  ;;  %vm353_vm7 = vcmp.eq.f32.partialorder %v352_v57, 8.507059e+37 }
 0x435   :  { %v1239_v35 = vpop.eup %968  ;;  %v516_v38 = vsel %vm192_vm3, %v1237_v33, 0.0 }
 0x436   :  { %517 = vadd.xlane.f32.xlu0 %v516_v38  ;;  %v674_v39 = vsel %vm192_vm3, %v1239_v35, 0.0 }
 0x437   :  { %675 = vadd.xlane.f32.xlu1 %v674_v39 }
 0x438   :  { %v971_v41 = vpop.eup %970 }
 0x439   :  { %v344_v43 = vmul.f32 %v971_v41, %v328_v30  ;;  %v930_v44 = vpop.permute.xlu2 %929  ;;  %vm349_vm4 = vweird.f32 %v971_v41  ;;  %v973_v6 = vpop.eup %972 }
 0x43a   :  { %v931_v45 = vunpack.i.l.bf16 %v930_v44  ;;  %v932_v50 = vunpack.i.h.bf16 %v930_v44  ;;  %vm350_vm6 = vmor %vm348_vm5, %vm349_vm4  ;;  %v520_v7 = vmul.f32 %v973_v6, %v515_v63  ;;  %vm525_vm8 = vweird.f32 %v973_v6 }
 0x43b   :  { %v345_v47 = vsub.f32 1.0, %v344_v43  ;;  %vm526_vm10 = vmor %vm524_vm9, %vm525_vm8 }
 0x43c   :  { %387 = vmatpush.msrb.mxu0 %v931_v45  ;;  %v521_v31 = vsub.f32 1.0, %v520_v7 }
 0x43d   :  { %v346_v51 = vmul.f32 %v971_v41, %v345_v47 }
 0x43e   :  { %388 = vmatpush.msrb.mxu0 %v932_v50  ;;  %v522_v16 = vmul.f32 %v973_v6, %v521_v31 }
 0x43f   :  { %877 = vmatmul.msk.f32.vlgmr.msrb.gmra.mxu0 %vm192_vm3, %v357_v56  ;;  %v347_v58 = vadd.f32 %v971_v41, %v346_v51 }
 0x440   :  { %v523_v19 = vadd.f32 %v973_v6, %v522_v16  ;;  %v776_v16 = vperm.slane %v1101_v10, 1 }
 0x441   :  { %v351_v60 = vsel %vm350_vm6, %v971_v41, %v347_v58  ;;  %v397_v55 = vpop.permute.xlu2 %396 }
 0x442   :  { %v356_v61 = vsel %vm353_vm7, %v355_v59, %v351_v60  ;;  %420 = vmatpush.msra.mxu1 %v397_v55 }
 0x443   :  { %v358_v62 = vmul.f32 %v1221_v15, %v356_v61  ;;  %v943_v15 = vpack.i.bf16 %v1053_v0, %v1058_v1  ;;  %v527_v0 = vsel %vm526_vm10, %v973_v6, %v523_v19  ;;  %v531_v1 = vor.u32 1.1754944e-38, %v530_v20 }
 0x445   :  { %944 = vrot.lane.b32.xlu2 %v943_v15, %s1015_s6  ;;  %v532_v26 = vsel %vm529_vm11, %v531_v1, %v527_v0 }
 0x446   :  { %v547_v40 = vmul.f32 %v1217_v14, %v532_v26  ;;  %v1021_v26 = vmov 32.0  }
 0x447   :  { %878 = vmatmul.msk.f32.gmra.mxu0 %vm192_vm3, %v358_v62 }
 0x44a   :  { %939 = vrot.lane.b32.xlu0 %v1227_v37, %s1020_s11 }
 0x450   :  { %934 = vrot.lane.b32.xlu1 %v1227_v37, %s1018_s9 }
 0x4a1   :  { %v673_v3 = vpop.xlane.xlu1 %672 }
 0x4a2   :  { %974 = vrcp.f32 %v673_v3  ;;  %v688_v29 = vand.u32 2147483648, %v673_v3  ;;  %vm682_vm13 = vweird.f32 %v673_v3  ;;  %v686_v32 = vand.u32 2147483647, %v673_v3 }
 0x4a4   :  { %v689_v44 = vor.u32 1.1754944e-38, %v688_v29  ;;  %vm687_vm5 = vcmp.eq.f32.partialorder %v686_v32, 8.507059e+37 }
 0x4a8   :  { %v975_v11 = vpop.eup %974 }
 0x4a9   :  { %v518_v8 = vpop.xlane.xlu0 %517  ;;  %v678_v13 = vmul.f32 %v975_v11, %v673_v3  ;;  %vm683_vm12 = vweird.f32 %v975_v11 }
 0x4aa   :  { %976 = vrcp.f32 %v518_v8  ;;  %v1253_v9 = vpop.xlane.xlu1 %675  ;;  %vm1270_vm15 = vmor %vm682_vm13, %vm683_vm12  ;;  %v544_v38 = vand.u32 2147483648, %v518_v8  ;;  %vm538_vm2 = vweird.f32 %v518_v8  ;;  %v542_v43 = vand.u32 2147483647, %v518_v8 }
 0x4ab   :  { %978 = vrcp.f32 %v1253_v9  ;;  %v679_v17 = vsub.f32 1.0, %v678_v13  ;;  %v702_v57 = vand.u32 2147483648, %v1253_v9  ;;  %vm696_vm8 = vweird.f32 %v1253_v9 }
 0x4ac   :  { %v545_v49 = vor.u32 1.1754944e-38, %v544_v38  ;;  %vm543_vm6 = vcmp.eq.f32.partialorder %v542_v43, 8.507059e+37  ;;  %v700_v61 = vand.u32 2147483647, %v1253_v9  ;;  %980 = vrcp.f32 %v1021_v26 }
 0x4ad   :  { %v680_v23 = vmul.f32 %v975_v11, %v679_v17  ;;  %v703_v63 = vor.u32 1.1754944e-38, %v702_v57 }
 0x4ae   :  { %vm701_vm10 = vcmp.eq.f32.partialorder %v700_v61, 8.507059e+37 }
 0x4af   :  { %v681_v52 = vadd.f32 %v975_v11, %v680_v23 }
 0x4b0   :  { %v1256_v12 = vpop.eup %976 }
 0x4b1   :  { %v534_v37 = vmul.f32 %v1256_v12, %v518_v8  ;;  %v1262_v18 = vpop.eup %978  ;;  %vm539_vm14 = vweird.f32 %v1256_v12  ;;  %v685_v41 = vsel %vm1270_vm15, %v975_v11, %v681_v52 }
 0x4b2   :  { %v692_v24 = vmul.f32 %v1262_v18, %v1253_v9  ;;  %vm1278_vm4 = vmor %vm538_vm2, %vm539_vm14  ;;  %v690_v47 = vsel %vm687_vm5, %v689_v44, %v685_v41  ;;  %vm697_vm7 = vweird.f32 %v1262_v18  ;;  %v981_v52 = vpop.eup %980 }
 0x4b3   :  { %v535_v21 = vsub.f32 1.0, %v534_v37  ;;  %v705_v60 = vmul.f32 %v1233_v53, %v690_v47  ;;  %vm698_vm9 = vmor %vm696_vm8, %vm697_vm7  ;;  %v945_v53 = vpop.permute.xlu2 %944 }
 0x4b4   :  { %v693_v27 = vsub.f32 1.0, %v692_v24  ;;  %v947_v7 = vunpack.i.h.bf16 %v945_v53  ;;  %v946_v8 = vunpack.i.l.bf16 %v945_v53 }
 0x4b5   :  { %v536_v25 = vmul.f32 %v1256_v12, %v535_v21 }
 0x4b6   :  { %v694_v42 = vmul.f32 %v1262_v18, %v693_v27  ;;  %608 = vmatpush.msrb.mxu1 %v946_v8 }
 0x4b7   :  { %v537_v34 = vadd.f32 %v1256_v12, %v536_v25 }
 0x4b8   :  { %v695_v56 = vadd.f32 %v1262_v18, %v694_v42 }
 0x4b9   :  { %v541_v14 = vsel %vm1278_vm4, %v1256_v12, %v537_v34 }
 0x4ba   :  { %v546_v59 = vsel %vm543_vm6, %v545_v49, %v541_v14  ;;  %v699_v55 = vsel %vm698_vm9, %v1262_v18, %v695_v56 }
 0x4bb   :  { %v548_v62 = vmul.f32 %v1237_v33, %v546_v59  ;;  %v704_v3 = vsel %vm701_vm10, %v703_v63, %v699_v55 }
 0x4bc   :  { %v940_v28 = vpop.permute.xlu0 %939  ;;  %v390_v4 = vpop.f32.mrf.mxu0  ;;  %v706_v6 = vmul.f32 %v1239_v35, %v704_v3 }
 0x4bd   :  { %v941_v30 = vunpack.i.l.bf16 %v940_v28  ;;  %879 = vmatmul.msk.f32.vlgmr.msra.gmra.mxu1 %vm158_vm1, %v390_v4  ;;  %v942_v39 = vunpack.i.h.bf16 %v940_v28 }
 0x4bf   :  { %575 = vmatpush.msra.mxu0 %v941_v30 }
 0x4c1   :  { %576 = vmatpush.msra.mxu0 %v942_v39 }
 0x4c2   :  { %v935_v46 = vpop.permute.xlu1 %934  ;;  %887 = vmatmul.msk.f32.vlgmr.msra.gmra.mxu0 %vm192_vm3, %v547_v40 }
 0x4c3   :  { %v936_v50 = vunpack.i.l.bf16 %v935_v46  ;;  %v937_v58 = vunpack.i.h.bf16 %v935_v46  ;;  %766 = vmatpush.msrb.mxu0 %v947_v7 }
 0x4c4   :  { %v393_v51 = vpop.f32.mrf.mxu0 }
 0x4c5   :  { %733 = vmatpush.msrb.mxu3 %v936_v50  ;;  %880 = vmatmul.msk.f32.gmra.mxu1 %vm158_vm1, %v393_v51 }
 0x4c7   :  { %734 = vmatpush.msrb.mxu3 %v937_v58 }
 0x4c8   :  { %895 = vmatmul.msk.f32.vlgmr.msrb.gmra.mxu3 %vm192_vm3, %v705_v60 }
 0x4ca   :  { %888 = vmatmul.msk.f32.gmra.mxu0 %vm192_vm3, %v548_v62 }
 0x4d0   :  { %896 = vmatmul.msk.f32.gmra.mxu3 %vm192_vm3, %v706_v6 }
 0x53a   :  { %v422_v35 = vpop.f32.mrf.mxu1 }
 0x53b   :  { %v455_v15 = vadd.f32 %v1200_v48, %v422_v35 }
 0x53f   :  { %v578_v9 = vpop.f32.mrf.mxu0 }
 0x540   :  { %889 = vmatmul.msk.f32.vlgmr.msrb.gmra.mxu1 %vm158_vm1, %v578_v9 }
 0x542   :  { %v425_v12 = vpop.f32.mrf.mxu1 }
 0x543   :  { %v458_v21 = vadd.f32 %v1202_v54, %v425_v12  ;;  %v788_v54 = vmul.f32 32.0, %v981_v52 }
 0x545   :  { %v789_v27 = vsub.f32 1.0, %v788_v54 }
 0x547   :  { %v581_v33 = vpop.f32.mrf.mxu0 }
 0x548   :  { %890 = vmatmul.msk.f32.gmra.mxu1 %vm158_vm1, %v581_v33 }
 0x54b   :  { %v736_v11 = vpop.f32.mrf.mxu3 }
 0x54c   :  { %897 = vmatmul.msk.f32.vlgmr.msrb.gmra.mxu0 %vm158_vm1, %v736_v11 }
 0x553   :  { %v739_v31 = vpop.f32.mrf.mxu3 }
 0x554   :  { %898 = vmatmul.msk.f32.gmra.mxu0 %vm158_vm1, %v739_v31  ;;  %vm792_vm1 = vweird.f32 %v981_v52 }
 0x5bd   :  { %v610_v13 = vpop.f32.mrf.mxu1 }
 0x5be   :  { %v616_v37 = vadd.f32 %v610_v13, %v455_v15 }
 0x5c5   :  { %v613_v20 = vpop.f32.mrf.mxu1 }
 0x5c6   :  { %v617_v23 = vadd.f32 %v613_v20, %v458_v21 }
 0x5c9   :  { %v768_v17 = vpop.f32.mrf.mxu0 }
 0x5ca   :  { %v774_v18 = vadd.f32 %v768_v17, %v616_v37 }
 0x5cc   :  { %v777_v19 = vadd.f32 %v776_v16, %v774_v18 }
 0x5ce   :  { %v779_v22 = vadd.f32 %v777_v19, %v1078_v5  ;;  %v790_v5 = vmul.f32 %v981_v52, %v789_v27 }
 0x5d0   :  { %v781_v24 = vsel %vm30_vm0, %v779_v22, 0.0  ;;  %v791_v28 = vadd.f32 %v981_v52, %v790_v5 }
 0x5d1   :  { %v771_v0 = vpop.f32.mrf.mxu0  ;;  %782 = vadd.xlane.f32.xlu0 %v781_v24 }
 0x5d2   :  { %v775_v1 = vadd.f32 %v771_v0, %v617_v23  ;;  %v793_v4 = vsel %vm792_vm1, %v981_v52, %v791_v28 }
 0x5d4   :  { %v778_v25 = vadd.f32 %v776_v16, %v775_v1 }
 0x5d6   :  { %v780_v48 = vadd.f32 %v778_v25, %v1064_v2 }
 0x5d8   :  { %v784_v10 = vsel %vm30_vm0, %v780_v48, 0.0 }
 0x5d9   :  { %785 = vadd.xlane.f32.xlu1 %v784_v10 }
 0x5f2   :  { %833 = vrot.lane.b32.xlu1 %v776_v16, %s1012_s2 }
 0x644   :  { %v783_v29 = vpop.xlane.xlu0 %782 }
 0x645   :  { %v794_v30 = vmul.f32 %v793_v4, %v783_v29 }
 0x647   :  { %v796_v32 = vsub.f32 %v779_v22, %v794_v30 }
 0x649   :  { %v798_v34 = vmul.f32 %v796_v32, %v796_v32 }
 0x64b   :  { %v800_v2 = vsel %vm30_vm0, %v798_v34, 0.0 }
 0x64c   :  { %801 = vadd.xlane.f32.xlu2 %v800_v2  ;;  %v786_v36 = vpop.xlane.xlu1 %785 }
 0x64d   :  { %v795_v38 = vmul.f32 %v793_v4, %v786_v36 }
 0x64f   :  { %v797_v39 = vsub.f32 %v780_v48, %v795_v38 }
 0x651   :  { %v799_v40 = vmul.f32 %v797_v39, %v797_v39 }
 0x653   :  { %v803_v41 = vsel %vm30_vm0, %v799_v40, 0.0 }
 0x654   :  { %804 = vadd.xlane.f32.xlu0 %v803_v41 }
 0x664   :  { %838 = vrot.lane.b32.xlu2 %v776_v16, %s1013_s3  ;;  %v834_v62 = vpop.permute.xlu1 %833 }
 0x6bf   :  { %v802_v42 = vpop.xlane.xlu2 %801 }
 0x6c0   :  { %v806_v43 = vmul.f32 %v802_v42, %v793_v4 }
 0x6c2   :  { %v808_v44 = vadd.f32 1e-05, %v806_v43 }
 0x6c4   :  { %982 = vrsqrt.f32 %v808_v44  ;;  %vm816_vm11 = vweird.f32 %v808_v44 }
 0x6c7   :  { %v805_v45 = vpop.xlane.xlu0 %804  ;;  %v839_v3 = vpop.permute.xlu2 %838 }
 0x6c8   :  { %v807_v46 = vmul.f32 %v805_v45, %v793_v4 }
 0x6ca   :  { %v983_v14 = vpop.eup %982  ;;  %v809_v47 = vadd.f32 1e-05, %v807_v46 }
 0x6cb   :  { %v811_v49 = vmul.f32 %v983_v14, %v808_v44  ;;  %vm817_vm3 = vweird.f32 %v983_v14 }
 0x6cc   :  { %984 = vrsqrt.f32 %v809_v47  ;;  %vm818_vm12 = vmor %vm816_vm11, %vm817_vm3  ;;  %vm826_vm14 = vweird.f32 %v809_v47 }
 0x6cd   :  { %v812_v50 = vmul.f32 %v983_v14, %v811_v49 }
 0x6cf   :  { %v813_v51 = vmul.f32 0.5, %v812_v50 }
 0x6d1   :  { %v814_v56 = vsub.f32 1.5, %v813_v51 }
 0x6d2   :  { %v985_v57 = vpop.eup %984 }
 0x6d3   :  { %v821_v58 = vmul.f32 %v985_v57, %v809_v47  ;;  %v815_v59 = vmul.f32 %v983_v14, %v814_v56  ;;  %vm827_vm13 = vweird.f32 %v985_v57 }
 0x6d4   :  { %vm828_vm15 = vmor %vm826_vm14, %vm827_vm13 }
 0x6d5   :  { %v822_v60 = vmul.f32 %v985_v57, %v821_v58  ;;  %v819_v61 = vsel %vm818_vm12, %v983_v14, %v815_v59 }
 0x6d6   :  { %v830_v55 = vmul.f32 %v819_v61, %v796_v32 }
 0x6d7   :  { %v823_v63 = vmul.f32 0.5, %v822_v60 }
 0x6d8   :  { %v836_v6 = vmul.f32 %v834_v62, %v830_v55 }
 0x6d9   :  { %v824_v53 = vsub.f32 1.5, %v823_v63 }
 0x6da   :  { %v841_v7 = vadd.f32 %v839_v3, %v836_v6 }
 0x6db   :  { %v825_v8 = vmul.f32 %v985_v57, %v824_v53 }
 0x6dc   :  { %843 = vst.msk [vmem:[#allocation2] sm:$0xff] %vm30_vm0, %v841_v7 }
 0x6dd   :  { %v829_v9 = vsel %vm828_vm15, %v985_v57, %v825_v8 }
 0x6de   :  { %v831_v33 = vmul.f32 %v829_v9, %v797_v39 }
 0x6e0   :  { %v837_v11 = vmul.f32 %v834_v62, %v831_v33 }
 0x6e2   :  { %v842_v31 = vadd.f32 %v839_v3, %v837_v11 }
 0x6e4   :  { %844 = vst.msk [vmem:[#allocation2 + $0x8] sm:$0xff] %vm30_vm0, %v842_v31 }
 0x6e5   :  { %857 = dma.vmem_to_hbm [thread:$0]  %s850_s13, 256, %s852_s16, [#allocation3], %s1023_s17, %s1023_s17, %s1024_s18  }
 0x6e6   :  { %1010 = dma.done.wait [#allocation3], 256  }
 0x6e7   :  { %1011 = vsyncadd [#allocation3], 4294967040 }
 0x6e8   :  { %862 = vsyncpa [#allocation3], 1 }

</bundles_post_ra>
